<compile_context>
chip_gen: v6e
topology: v6e:2x2x1
jax: 0.10.0
libtpu: 0.0.40
codegen_flags: <defaults>
</compile_context>

<pallas_src>
import math

import jax
import jax.numpy as jnp
from jax.experimental import pallas as pl
from jax.experimental.pallas import tpu as pltpu


# ------------------------------- kernel ------------------------------------ #
def _pos_enc_add_kernel(x_ref, pe_ref, o_ref):
    # Works for 2-D and 3-D blocks; pe block broadcasts over the batch axis when
    # it has a single row, and is a plain elementwise add in the rows-packed path.
    o_ref[...] = x_ref[...] + pe_ref[...]


# ------------------------------ helpers ------------------------------------ #
_VMEM_BUDGET = 24 << 20   # padded, double-buffered working-set target (safe on v7x 64 MiB)
_VMEM_LIMIT = 32 << 20    # explicit scoped-VMEM limit handed to Mosaic


def _round_up(n: int, m: int) -> int:
    return (n + m - 1) // m * m


def _sublane_pack(dtype) -> int:
    # rows per vreg sublane group: f32 -> 8, bf16 -> 16, int8/fp8 -> 32
    return 32 // jnp.dtype(dtype).itemsize


def _pick_col_tile(total_cols: int, bytes_per_col: int, budget_bytes: int,
                   min_steps: int) -> int:
    """Largest multiple-of-128 column tile that divides total_cols, keeps the padded
    double-buffered footprint under budget, and yields >= min_steps grid steps."""
    assert total_cols % 128 == 0
    by_vmem = max(128, (budget_bytes // max(1, bytes_per_col)) // 128 * 128)
    by_steps = max(128, (total_cols // max(1, min_steps)) // 128 * 128)
    tc = min(total_cols, by_vmem, by_steps)
    while total_cols % tc != 0:
        tc -= 128
    return tc


# ------------------------------ forward ------------------------------------ #
def positional_encoding_forward(x: jnp.ndarray, pe_flat: jnp.ndarray,
                                *, donate_x: bool = False) -> jnp.ndarray:
    """x: (B, S, D). pe_flat: (1, S*D), already sliced to S, cast to x.dtype, flattened."""
    B, S, D = x.shape
    total_cols = S * D
    assert pe_flat.shape == (1, total_cols) and pe_flat.dtype == x.dtype

    itemsize = jnp.dtype(x.dtype).itemsize
    pack = _sublane_pack(x.dtype)
    total_bytes = B * total_cols * itemsize
    # Multiple grid steps let the pipeline overlap DMA-in / add / DMA-out and give both
    # v7x TensorCores work; only worth paying per-step overhead when data is non-trivial.
    min_steps = 4 if total_bytes > (4 << 20) else 1
    io_alias = {0: 0} if donate_x else {}

    # ---- Path B: rows-packed (small batch, lane width allows folding) ----------------
    if B < pack and total_cols % (pack * 128) == 0:
        k = pack
        cols = total_cols // k
        x3 = x.reshape(B * k, cols)        # row b*k+g = x[b].flat[g*cols:(g+1)*cols]
        pe3 = pe_flat.reshape(k, cols)
        # physical (padded) double-buffered bytes per tile column: x + pe + out
        bytes_per_col = 2 * (3 * k) * itemsize
        tc = _pick_col_tile(cols, bytes_per_col, _VMEM_BUDGET, min_steps)
        grid = (cols // tc, B)             # batch innermost -> pe tile stays resident
        out3 = pl.pallas_call(
            _pos_enc_add_kernel,
            out_shape=jax.ShapeDtypeStruct((B * k, cols), x.dtype),
            grid=grid,
            in_specs=[
                pl.BlockSpec((k, tc), lambda c, b: (b, c)),
                pl.BlockSpec((k, tc), lambda c, b: (0, c)),   # constant over batch axis
            ],
            out_specs=pl.BlockSpec((k, tc), lambda c, b: (b, c)),
            input_output_aliases=io_alias,
            compiler_params=pltpu.CompilerParams(
                dimension_semantics=("parallel", "parallel"),
                vmem_limit_bytes=_VMEM_LIMIT),
        )(x3, pe3)
        return out3.reshape(B, S, D)

    # ---- Path A: lane-dense flatten with broadcast pe block --------------------------
    if total_cols % 128 == 0:
        x2 = x.reshape(B, total_cols)
        padB = _round_up(B, pack)
        # Row tile: full batch when it fits at the minimum 128-wide column tile,
        # otherwise the largest pack-multiple that does (grid then also tiles rows).
        rows_cap = max(pack,
                       ((_VMEM_BUDGET // (2 * itemsize * 128) - pack) // 2) // pack * pack)
        rb = B if padB <= rows_cap else rows_cap
        n_row = pl.cdiv(B, rb)
        bytes_per_col = 2 * (2 * _round_up(rb, pack) + pack) * itemsize
        tc = _pick_col_tile(total_cols, bytes_per_col, _VMEM_BUDGET, min_steps)
        grid = (total_cols // tc, n_row)   # rows innermost -> pe tile stays resident
        out2 = pl.pallas_call(
            _pos_enc_add_kernel,
            out_shape=jax.ShapeDtypeStruct((B, total_cols), x.dtype),
            grid=grid,
            in_specs=[
                pl.BlockSpec((rb, tc), lambda c, r: (r, c)),
                pl.BlockSpec((1, tc), lambda c, r: (0, c)),   # broadcast over batch
            ],
            out_specs=pl.BlockSpec((rb, tc), lambda c, r: (r, c)),
            input_output_aliases=io_alias,
            compiler_params=pltpu.CompilerParams(
                dimension_semantics=("parallel", "parallel"),
                vmem_limit_bytes=_VMEM_LIMIT),
        )(x2, pe_flat)
        return out2.reshape(B, S, D)

    # ---- Fallback: S*D not lane-aligned -> tile along the sequence axis --------------
    # Correct (just not lane-dense); block size is still VMEM-budgeted.
    pe3d = pe_flat.reshape(1, S, D)
    padD = _round_up(D, 128)
    per_seq_row = 2 * (2 * B + 1) * padD * itemsize   # x + out + pe, double-buffered
    ts_cap = max(pack, (_VMEM_BUDGET // per_seq_row) // pack * pack)
    ts = S if S <= ts_cap else ts_cap
    grid = (pl.cdiv(S, ts),)
    return pl.pallas_call(
        _pos_enc_add_kernel,
        out_shape=jax.ShapeDtypeStruct((B, S, D), x.dtype),
        grid=grid,
        in_specs=[
            pl.BlockSpec((B, ts, D), lambda s: (0, s, 0)),
            pl.BlockSpec((1, ts, D), lambda s: (0, s, 0)),
        ],
        out_specs=pl.BlockSpec((B, ts, D), lambda s: (0, s, 0)),
        input_output_aliases=io_alias,
        compiler_params=pltpu.CompilerParams(
            dimension_semantics=("parallel",),
            vmem_limit_bytes=_VMEM_LIMIT),
    )(x, pe3d)


# ------------------------------ module-level API ---------------------------------- #
def make_positional_encodings(maxlen: int, d_model: int) -> jnp.ndarray:
    """Deterministic sinusoidal PE, identical to the PyTorch buffer. Shape (1, maxlen, d)."""
    position = jnp.arange(0, maxlen, dtype=jnp.float32)[:, None]
    div_term = jnp.exp(
        jnp.arange(0, d_model, 2, dtype=jnp.float32) * (-math.log(10000.0) / d_model))
    pe = jnp.zeros((maxlen, d_model), dtype=jnp.float32)
    pe = pe.at[:, 0::2].set(jnp.sin(position * div_term))
    pe = pe.at[:, 1::2].set(jnp.cos(position * div_term)[:, : d_model // 2])
    return pe[None, :, :]


class PositionalEncoding:
    """JAX/Pallas port of the PyTorch module. forward(x) == x + pe[:, :seq_len, :]."""

    def __init__(self, d_model: int, maxlen: int):
        self.d_model = d_model
        self.maxlen = maxlen
        self.pe = make_positional_encodings(maxlen, d_model)   # f32 buffer
        self._pe_flat_cache = {}                                # (S, dtype) -> (1, S*D)

    def _flat_pe(self, seq_len: int, dtype) -> jnp.ndarray:
        key = (int(seq_len), jnp.dtype(dtype).name)
        buf = self._pe_flat_cache.get(key)
        if buf is None:
            # Hoisted out of the per-call path: slice / cast / flatten pe exactly once.
            buf = self.pe[:, :seq_len, :].astype(dtype).reshape(1, seq_len * self.d_model)
            self._pe_flat_cache[key] = buf
        return buf

    def __call__(self, x: jnp.ndarray, *, donate_x: bool = False) -> jnp.ndarray:
        B, S, D = x.shape
        if D != self.d_model:
            raise ValueError(f"expected last dim {self.d_model}, got {D}")
        if S > self.maxlen:
            raise ValueError(f"seq_len {S} exceeds maxlen {self.maxlen}")
        return positional_encoding_forward(x, self._flat_pe(S, x.dtype), donate_x=donate_x)


# ----------------------------------- test ----------------------------------------- #
if __name__ == "__main__":
    # Config: d_model=32, maxlen=16; input (batch=2, seq=8, d_model=32)
    d_model, maxlen = 32, 16
    B, S = 2, 8

    key = jax.random.PRNGKey(0)
    x = jax.random.normal(key, (B, S, d_model), dtype=jnp.float32)

    module = PositionalEncoding(d_model, maxlen)
    out = jax.block_until_ready(module(x))

    # Sanity check against plain-JAX reference.
    ref = x + module.pe[:, :S, :]
    assert out.shape == (B, S, d_model)
    assert jnp.allclose(out, ref, atol=1e-6, rtol=1e-6)

    print("KERNEL_OK")
</pallas_src>

<mosaic_0001>
module attributes {stable_mosaic.version = 11 : i64} {
  func.func @_pos_enc_add_kernel(%arg0: i32, %arg1: i32, %arg2: memref<2x256xf32, #tpu.memory_space<vmem>>, %arg3: memref<1x256xf32, #tpu.memory_space<vmem>>, %arg4: memref<2x256xf32, #tpu.memory_space<vmem>>) attributes {dimension_semantics = [#tpu.dimension_semantics<parallel>, #tpu.dimension_semantics<parallel>], iteration_bounds = array<i64: 1, 1>, scalar_prefetch = 0 : i64, scratch_operands = 0 : i64, tpu.core_type = #tpu.core_type<tc>, window_params = [{transform_indices = @transform_0, window_bounds = array<i64: 2, 256>}, {transform_indices = @transform_1, window_bounds = array<i64: 1, 256>}, {transform_indices = @transform_2, window_bounds = array<i64: 2, 256>}]} {
    %c0 = arith.constant 0 : index
    %c0_0 = arith.constant 0 : index
    %0 = vector.load %arg2[%c0, %c0_0] : memref<2x256xf32, #tpu.memory_space<vmem>>, vector<2x256xf32>
    %c0_1 = arith.constant 0 : index
    %c0_2 = arith.constant 0 : index
    %1 = vector.load %arg3[%c0_1, %c0_2] : memref<1x256xf32, #tpu.memory_space<vmem>>, vector<1x256xf32>
    %2 = vector.broadcast %1 : vector<1x256xf32> to vector<2x256xf32>
    %3 = arith.addf %0, %2 : vector<2x256xf32>
    %c0_3 = arith.constant 0 : index
    %c0_4 = arith.constant 0 : index
    %4 = vector.load %arg4[%c0_3, %c0_4] : memref<2x256xf32, #tpu.memory_space<vmem>>, vector<2x256xf32>
    tpu.vector_store %arg4[%c0_3, %c0_4], %3 {strides = array<i32>} : memref<2x256xf32, #tpu.memory_space<vmem>>, vector<2x256xf32>,
    return
  }
  func.func @transform_0(%arg0: i32, %arg1: i32) -> (i32, i32) {
    %c0_i32 = arith.constant 0 : i32
    return %arg1, %arg0 : i32, i32
  }
  func.func @transform_1(%arg0: i32, %arg1: i32) -> (i32, i32) {
    %c0_i32 = arith.constant 0 : i32
    %c0_i32_0 = arith.constant 0 : i32
    return %c0_i32, %arg0 : i32, i32
  }
  func.func @transform_2(%arg0: i32, %arg1: i32) -> (i32, i32) {
    %c0_i32 = arith.constant 0 : i32
    return %arg1, %arg0 : i32, i32
  }
}

</mosaic_0001>

<bundles_post_ra>
// kernel: tpu_custom_call.1
= control target key start
LH: loop header
LB: loop body
LE: loop exit
PB: predicated region body
PF: predicated region fallthrough
CT: control target
= control target key end

     0   :  { %7 = vsyncpa [#allocation3], 0  ;;  %s172_s0 = inlined_call_operand.hbm [shape: f32[2,256], index: 0, kind: input, shape index: {}]   ;;  %s173_s1 = inlined_call_operand.hbm [shape: f32[1,256], index: 1, kind: input, shape index: {}]   ;;  %s174_s2 = inlined_call_operand.hbm [shape: f32[2,256], index: 2, kind: output, shape index: {}]  }
   0x1   :  { %8 = vsyncpa [#allocation6], 0 }
   0x2   :  { %9 = vsyncpa [#allocation4], 0  ;;  %s144_s9 = smov [#allocation2]   ;;  %s145_s11 = smov [#allocation5]  }
   0x3   :  { %s16_s10 = sshll.u32 %s144_s9, 4  ;;  %s26_s12 = sshll.u32 %s145_s11, 4  ;;  %s17_s10 = int_to_ptr.vmem [resolvable:$true] %s16_s10  ;;  %s27_s12 = int_to_ptr.vmem [resolvable:$true] %s26_s12 }
   0x4   :  { %s86_s13 = scalar_lea.vmem %s17_s10, 64  ;;  %p91_p1 = scmp.lt.s32.totalorder %s17_s10, %s17_s10 }
   0x5   :  { %p87_p0 = scmp.ne.s32.totalorder %s17_s10, %s86_s13  ;;  %p92_p2 = scmp.lt.s32.totalorder %s86_s13, %s86_s13 }
   0x7   :  { %p93_p3 = por %p92_p2, %p91_p1 }
   0x9   :  { %p94_p4 = pnand %p93_p3, %p87_p0 }
   0xb   :  { %97 = shalt.err (!%p94_p4)
}
   0xc   :  { %19 = dma.hbm_to_vmem [thread:$0]  %s172_s0, 64, %s17_s10, [#allocation3]  }
   0xd   :  { %s106_s16 = scalar_lea.vmem %s27_s12, 32  ;;  %p111_p6 = scmp.lt.s32.totalorder %s27_s12, %s27_s12 }
   0xe   :  { %p107_p5 = scmp.ne.s32.totalorder %s27_s12, %s106_s16  ;;  %p112_p7 = scmp.lt.s32.totalorder %s106_s16, %s106_s16 }
  0x10   :  { %p113_p8 = por %p112_p7, %p111_p6 }
  0x12   :  { %p114_p9 = pnand %p113_p8, %p107_p5 }
  0x14   :  { %117 = shalt.err (!%p114_p9)
}
  0x15   :  { %29 = dma.hbm_to_vmem [thread:$0]  %s173_s1, 32, %s27_s12, [#allocation6]  }
  0x16   :  { %138 = dma.done.wait [#allocation3], 64  }
  0x17   :  { %139 = vsyncadd [#allocation3], 4294967232 }
  0x18   :  { %140 = dma.done.wait [#allocation6], 32  }
  0x19   :  { %141 = vsyncadd [#allocation6], 4294967264  ;;  %v39_v0 = vlaneseq  ;;  %v146_v1 = vmov 1983009808   ;;  %v37_v7 = vld [vmem:[#allocation5] sm:$0x3] }
  0x1a   :  { %v49_v2 = vunpack.c.l.s4 %v146_v1  ;;  %v36_v12 = vld [vmem:[#allocation2] sm:$0xf]  ;;  %s147_s0 = smov [#allocation7]  }
  0x1b   :  { %v40_v3 = vshrl.u32 %v39_v0, 7  ;;  %s64_s19 = sshll.u32 %s147_s0, 4  ;;  %s65_s19 = int_to_ptr.vmem [resolvable:$true] %s64_s19 }
  0x1c   :  { %v50_v6 = vunpack.c.0.s8 %v49_v2  ;;  %s118_s1 = scalar_lea.vmem %s65_s19, 64  ;;  %p123_p11 = scmp.lt.s32.totalorder %s65_s19, %s65_s19 }
  0x1d   :  { %v41_v4 = vsub.s32 0, %v40_v3  ;;  %v45_v5 = vsub.s32 1, %v40_v3  ;;  %p119_p10 = scmp.ne.s32.totalorder %s65_s19, %s118_s1  ;;  %p124_p12 = scmp.lt.s32.totalorder %s118_s1, %s118_s1 }
  0x1e   :  { %v53_v10 = vsub.s32 %v50_v6, %v40_v3 }
  0x1f   :  { %v42_v8 = vrot.slane %v37_v7, %v41_v4  ;;  %v46_v9 = vrot.slane %v37_v7, %v45_v5  ;;  %p125_p13 = por %p124_p12, %p123_p11 }
  0x21   :  { %v47_v11 = vcombine.low %v42_v8, %v46_v9  ;;  %p126_p0 = pnand %p125_p13, %p119_p10 }
  0x23   :  { %v54_v13 = vrot.slane %v47_v11, %v53_v10 }
  0x25   :  { %v56_v14 = vadd.f32 %v54_v13, %v36_v12 }
  0x27   :  { %57 = vst [vmem:[#allocation7] sm:$0xf] %v56_v14 }
  0x28   :  { %129 = shalt.err (!%p126_p0)
}
  0x29   :  { %67 = dma.vmem_to_hbm [thread:$0]  %s65_s19, 64, %s174_s2, [#allocation4]  }
  0x2a   :  { %142 = dma.done.wait [#allocation4], 64  }
  0x2b   :  { %143 = vsyncadd [#allocation4], 4294967232 }
  0x2c   :  { %71 = vsyncpa [#allocation3], 1 }
  0x2d   :  { %72 = vsyncpa [#allocation6], 1 }
  0x2e   :  { %73 = vsyncpa [#allocation4], 1 }

</bundles_post_ra>
